<compile_context>
chip_gen: v7x
topology: tpu7x:2x2x1
jax: 0.10.0
libtpu: 0.0.40
codegen_flags: <defaults>
</compile_context>

<pallas_src>
import functools
import math

import jax
import jax.numpy as jnp
from jax.experimental import pallas as pl
from jax.experimental.pallas import tpu as pltpu


_LANE = 128
_MIB = 1024 * 1024
_MAX_REPACK = 8  # largest seq-repack factor expanded via the in-kernel select chain


def _device_kind():
    try:
        return jax.devices()[0].device_kind.lower()
    except Exception:  # pragma: no cover - defensive
        return ""


_KIND = _device_kind()
# v5e and older: 16 MiB default scoped VMEM and modest HBM BW -> keep the
# double-buffered footprint ~12 MiB.  v6e/v7x: ~24 MiB (still inside the
# 32 MiB default scoped VMEM and v7x's 64 MiB physical VMEM).
_IS_OLD_GEN = any(t in _KIND for t in ("v2", "v3", "v4", "v5"))
_IS_V7 = ("7" in _KIND) and not _IS_OLD_GEN

_VMEM_BUDGET_BYTES = (12 if _IS_OLD_GEN else 24) * _MIB
_VMEM_LIMIT_BYTES = 32 * _MIB           # explicit; safe on every generation
_MIN_GRID_STEPS = 4 if _IS_V7 else 1    # v7x: 2 TCs -> want >= 2 (aim 4) steps


def _sublane_pack(dtype):
    itemsize = jnp.dtype(dtype).itemsize
    return 8 * max(1, 4 // itemsize)    # 8 for f32, 16 for bf16, 32 for int8


def _round_up(x, m):
    return ((x + m - 1) // m) * m


def _pick_flat_layout(n):
    """Pick a lane-dense (rows, lanes) factorization of n, or None."""
    for lanes in (4096, 2048, 1024, 512, 256, 128):
        if n % lanes == 0:
            return n // lanes, lanes
    return None


def _pick_block_rows(rows, per_row_vmem_bytes, pack, min_steps):
    """Largest sublane-aligned row tile whose double-buffered, lane-padded
    VMEM footprint fits the generation budget.  On v7x the tile is also capped
    so the grid keeps >= min_steps steps whenever the row extent allows it."""
    br = max(1, _VMEM_BUDGET_BYTES // max(1, per_row_vmem_bytes))
    if min_steps > 1:
        cap = (rows // min_steps // pack) * pack
        if cap >= pack:
            br = min(br, cap)
    if br >= rows:
        return rows
    return max(pack, (br // pack) * pack)


# --------------------------------------------------------------------------
# Kernels
# --------------------------------------------------------------------------
def _add_kernel(rep, x_ref, y_ref, o_ref):
    """Elementwise add of one (block_rows, cols) tile.

    y_ref is either (block_rows, cols) (same shape), (block_rows, 1)
    (lane-broadcast), or (block_rows, k) with cols == k*rep, in which case
    each y element covers `rep` consecutive lanes.  The expansion is done with
    a short VPU compare/select chain so the broadcast operand is never
    materialized in HBM and no cross-lane reshape is needed.
    """
    x = x_ref[...]
    y = y_ref[...]
    if rep == 1:
        o_ref[...] = x + y          # direct add, or (br,1) lane broadcast
        return
    br, k = y.shape
    cols = k * rep
    lane = jax.lax.broadcasted_iota(jnp.int32, (br, cols), 1)
    y_exp = jnp.broadcast_to(y[:, k - 1:k], (br, cols))
    for j in range(k - 2, -1, -1):
        y_exp = jnp.where(lane < (j + 1) * rep, y[:, j:j + 1], y_exp)
    o_ref[...] = x + y_exp


def _bcast_add_kernel(x_ref, y_ref, o_ref):
    # Blocks are shaped so that jnp broadcasting resolves any size-1 axes of
    # the inputs against the full output block.
    o_ref[...] = x_ref[...] + y_ref[...]


# --------------------------------------------------------------------------
# pallas_call wrappers
# --------------------------------------------------------------------------
def _tiled_add_2d(x2d, y2d, out_dtype):
    """Tiled elementwise add on 2D views.

    y2d is (rows, cols), (rows, 1) or (rows, k) with cols % k == 0 (repacked
    seq-broadcast operand).
    """
    rows, cols = x2d.shape
    ycols = y2d.shape[1]
    itemsize = jnp.dtype(out_dtype).itemsize
    pack = _sublane_pack(out_dtype)

    # Padded (lane-rounded) VMEM bytes of ONE row across x + y + out, doubled
    # for the auto-pipeline's double buffering.
    per_row = 2 * (2 * _round_up(cols, _LANE) + _round_up(ycols, _LANE)) * itemsize
    block_rows = _pick_block_rows(rows, per_row, pack, _MIN_GRID_STEPS)
    grid = (pl.cdiv(rows, block_rows),)

    rep = 1 if ycols in (cols, 1) else cols // ycols
    bytes_accessed = (2 * rows * cols + rows * ycols) * itemsize

    return pl.pallas_call(
        functools.partial(_add_kernel, rep),
        out_shape=jax.ShapeDtypeStruct((rows, cols), out_dtype),
        grid=grid,
        in_specs=[
            pl.BlockSpec((block_rows, cols), lambda r: (r, 0)),
            pl.BlockSpec((block_rows, ycols), lambda r: (r, 0)),
        ],
        out_specs=pl.BlockSpec((block_rows, cols), lambda r: (r, 0)),
        compiler_params=pltpu.CompilerParams(
            dimension_semantics=("parallel",),
            vmem_limit_bytes=_VMEM_LIMIT_BYTES),
        cost_estimate=pl.CostEstimate(
            flops=rows * cols,
            transcendentals=0,
            bytes_accessed=bytes_accessed),
    )(x2d, y2d)


def _tiled_add_bcast_3d(x, y, out_shape, out_dtype):
    """General broadcasting add: broadcast axes are expressed via BlockSpec
    index_maps (block size 1 / block index 0), never materialized in HBM."""
    Bo, So, Do = out_shape
    itemsize = jnp.dtype(out_dtype).itemsize
    pack = _sublane_pack(out_dtype)

    # Conservative per-seq-row padded cost across x + y + out, double-buffered.
    per_row = 2 * (2 * _round_up(Do, _LANE)
                   + _round_up(y.shape[2], _LANE)) * itemsize
    bs = _pick_block_rows(So, per_row, pack, _MIN_GRID_STEPS)
    grid = (Bo, pl.cdiv(So, bs))

    def make_spec(arr):
        b_, s_, d_ = arr.shape
        blk = (1, 1 if s_ == 1 else bs, d_)

        def imap(bi, si, b_=b_, s_=s_):
            return (0 if b_ == 1 else bi, 0 if s_ == 1 else si, 0)

        return pl.BlockSpec(blk, imap)

    bytes_accessed = (x.size + y.size + Bo * So * Do) * itemsize

    return pl.pallas_call(
        _bcast_add_kernel,
        out_shape=jax.ShapeDtypeStruct((Bo, So, Do), out_dtype),
        grid=grid,
        in_specs=[make_spec(x), make_spec(y)],
        out_specs=pl.BlockSpec((1, bs, Do), lambda bi, si: (bi, si, 0)),
        compiler_params=pltpu.CompilerParams(
            dimension_semantics=("parallel", "parallel"),
            vmem_limit_bytes=_VMEM_LIMIT_BYTES),
        cost_estimate=pl.CostEstimate(
            flops=Bo * So * Do,
            transcendentals=0,
            bytes_accessed=bytes_accessed),
    )(x, y)


def _add_col_broadcast(dense, col, out_dtype):
    """dense: [B, S, Dd] + col: [B, S, 1], lane-dense whenever possible."""
    Bd, Sd, Dd = dense.shape
    rows = Bd * Sd
    if Dd % _LANE == 0:
        out = _tiled_add_2d(dense.reshape(rows, Dd), col.reshape(rows, 1),
                            out_dtype)
        return out.reshape(Bd, Sd, Dd)
    k = _LANE // math.gcd(Dd, _LANE)  # smallest k with (k*Dd) % 128 == 0
    if 1 < k <= _MAX_REPACK and rows % k == 0:
        # Pack k consecutive seq positions per row: output block last dim is
        # k*Dd (multiple of 128) -> unmasked full-width stores, no lane-pad
        # blow-up of the (rows, 1) operand in VMEM.
        out = _tiled_add_2d(dense.reshape(rows // k, k * Dd),
                            col.reshape(rows // k, k), out_dtype)
        return out.reshape(Bd, Sd, Dd)
    # TODO(synk): lane-sparse (masked-store) fallback when seq repacking is not
    # possible; correct but below HBM roofline.
    out = _tiled_add_2d(dense.reshape(rows, Dd), col.reshape(rows, 1),
                        out_dtype)
    return out.reshape(Bd, Sd, Dd)


# --------------------------------------------------------------------------
# Public entry point (Add3D.forward)
# --------------------------------------------------------------------------
def add3d(string, string_len, string2, string2_len):
    """Pallas implementation of Add3D.forward.

    Args:
      string:      [B, S, D]  array (first input)
      string_len:  [B]        int array (lengths of first input)
      string2:     [B, S, D] or [B, S, 1] (or otherwise broadcast-compatible)
      string2_len: [B]        (ignored, like the PyTorch module)

    Returns:
      (string + string2, string_len)
    """
    if string.ndim != 3 or string2.ndim != 3:
        raise ValueError("Add3D expects 3D [batch, seq_len, dim] inputs")

    B, S, D = string.shape
    b2, s2, d2 = string2.shape

    # Validation mirroring the PyTorch module's check.
    if S * D != s2 * d2:
        if not (S == s2 and (d2 == 1 or D == 1)):
            raise ValueError(
                "For layer Add3D, the dimensions of each inputs should be "
                "equal or 1, or the elements number of two inputs (except "
                "for the first dimension) should be equal")

    # torch.add type-promotes; mirror that instead of down-casting string2.
    out_dtype = jnp.result_type(string.dtype, string2.dtype)
    x = string.astype(out_dtype)
    y = string2.astype(out_dtype)

    if (b2, s2, d2) == (B, S, D):
        # Same shape: flatten to a lane-dense 2D view (large multiple of 128
        # lanes) so stores are full-width and the grid has real depth.
        n = B * S * D
        layout = _pick_flat_layout(n)
        if layout is not None:
            rows, lanes = layout
            out = _tiled_add_2d(x.reshape(rows, lanes), y.reshape(rows, lanes),
                                out_dtype)
        else:
            # TODO(synk): no clean 128-lane factorization -> lane-sparse but
            # correct (B*S, D) tiling.
            out = _tiled_add_2d(x.reshape(B * S, D), y.reshape(B * S, D),
                                out_dtype)
        out = out.reshape(B, S, D)

    elif b2 == B and s2 == S and d2 == 1 and D > 1:
        # Broadcast string2 along dim inside the kernel (no HBM blow-up).
        out = _add_col_broadcast(x, y, out_dtype)

    elif b2 == B and s2 == S and D == 1 and d2 > 1:
        # Symmetric case: string has trailing dim 1; addition commutes.
        out = _add_col_broadcast(y, x, out_dtype)

    else:
        # General broadcast fallback (e.g. batch-dim broadcasting).  Validate
        # compatibility (raises like torch.add would) but do the broadcast via
        # BlockSpec index_maps — nothing is materialized in HBM.
        out_shape = jnp.broadcast_shapes(x.shape, y.shape)
        out = _tiled_add_bcast_3d(x, y, out_shape, out_dtype)

    # The length Add3D returns is the length of the first input.
    return out, string_len


if __name__ == "__main__":
    key = jax.random.PRNGKey(0)
    k1, k2, k3, k4 = jax.random.split(key, 4)

    B, S, D = 2, 8, 32
    string = jax.random.normal(k1, (B, S, D), dtype=jnp.float32)
    string2 = jax.random.normal(k2, (B, S, D), dtype=jnp.float32)
    string_len = jnp.full((B,), S, dtype=jnp.int32)
    string2_len = jnp.full((B,), S, dtype=jnp.int32)

    # Same-shape path (lane-dense flattened tiling).
    out, out_len = add3d(string, string_len, string2, string2_len)
    jax.block_until_ready(out)
    jax.block_until_ready(out_len)
    assert jnp.allclose(out, string + string2, atol=1e-6), \
        "mismatch vs reference (equal shapes)"
    assert jnp.array_equal(out_len, string_len)

    # [B, S, 1] broadcast path: repacked lane-dense tiling, in-kernel expansion.
    string2_b = jax.random.normal(k3, (B, S, 1), dtype=jnp.float32)
    out_b, out_b_len = add3d(string, string_len, string2_b, string2_len)
    jax.block_until_ready(out_b)
    assert jnp.allclose(out_b, string + string2_b, atol=1e-6), \
        "mismatch vs reference (dim broadcast)"
    assert jnp.array_equal(out_b_len, string_len)

    # General broadcast fallback (batch broadcast via index_map, no HBM copy).
    string2_c = jax.random.normal(k4, (1, S, D), dtype=jnp.float32)
    out_c, _ = add3d(string, string_len, string2_c, string2_len)
    jax.block_until_ready(out_c)
    assert jnp.allclose(out_c, string + string2_c, atol=1e-6), \
        "mismatch vs reference (batch broadcast)"

    print("KERNEL_OK")
</pallas_src>

<mosaic_0001>
module attributes {stable_mosaic.version = 11 : i64} {
  func.func @_add_kernel(%arg0: i32, %arg1: memref<1x512xf32, #tpu.memory_space<vmem>>, %arg2: memref<1x512xf32, #tpu.memory_space<vmem>>, %arg3: memref<1x512xf32, #tpu.memory_space<vmem>>) attributes {dimension_semantics = [#tpu.dimension_semantics<parallel>], iteration_bounds = array<i64: 1>, scalar_prefetch = 0 : i64, scratch_operands = 0 : i64, tpu.core_type = #tpu.core_type<tc>, window_params = [{transform_indices = @transform_0, window_bounds = array<i64: 1, 512>}, {transform_indices = @transform_1, window_bounds = array<i64: 1, 512>}, {transform_indices = @transform_2, window_bounds = array<i64: 1, 512>}]} {
    %c0 = arith.constant 0 : index
    %c0_0 = arith.constant 0 : index
    %0 = vector.load %arg1[%c0, %c0_0] : memref<1x512xf32, #tpu.memory_space<vmem>>, vector<1x512xf32>
    %c0_1 = arith.constant 0 : index
    %c0_2 = arith.constant 0 : index
    %1 = vector.load %arg2[%c0_1, %c0_2] : memref<1x512xf32, #tpu.memory_space<vmem>>, vector<1x512xf32>
    %2 = arith.addf %0, %1 : vector<1x512xf32>
    %c0_3 = arith.constant 0 : index
    %c0_4 = arith.constant 0 : index
    %3 = vector.load %arg3[%c0_3, %c0_4] : memref<1x512xf32, #tpu.memory_space<vmem>>, vector<1x512xf32>
    tpu.vector_store %arg3[%c0_3, %c0_4], %2 {strides = array<i32>} : memref<1x512xf32, #tpu.memory_space<vmem>>, vector<1x512xf32>,
    return
  }
  func.func @transform_0(%arg0: i32) -> (i32, i32) {
    %c0_i32 = arith.constant 0 : i32
    %c0_i32_0 = arith.constant 0 : i32
    return %arg0, %c0_i32 : i32, i32
  }
  func.func @transform_1(%arg0: i32) -> (i32, i32) {
    %c0_i32 = arith.constant 0 : i32
    %c0_i32_0 = arith.constant 0 : i32
    return %arg0, %c0_i32 : i32, i32
  }
  func.func @transform_2(%arg0: i32) -> (i32, i32) {
    %c0_i32 = arith.constant 0 : i32
    %c0_i32_0 = arith.constant 0 : i32
    return %arg0, %c0_i32 : i32, i32
  }
}

</mosaic_0001>

<bundles_post_ra>
// kernel: tpu_custom_call.1
= control target key start
LH: loop header
LB: loop body
LE: loop exit
PB: predicated region body
PF: predicated region fallthrough
CT: control target
= control target key end

     0   :  { %7 = vsyncpa [#allocation3], 0  ;;  %s189_s0 = inlined_call_operand.hbm [shape: f32[1,512], index: 0, kind: input, shape index: {}]   ;;  %s190_s1 = inlined_call_operand.hbm [shape: f32[1,512], index: 1, kind: input, shape index: {}]   ;;  %s191_s2 = inlined_call_operand.hbm [shape: f32[1,512], index: 2, kind: output, shape index: {}]  }
   0x1   :  { %8 = vsyncpa [#allocation6], 0 }
   0x2   :  { %9 = vsyncpa [#allocation4], 0  ;;  %s135_s9 = smov [#allocation2]   ;;  %s136_s11 = smov [#allocation5]  }
   0x3   :  { %s16_s10 = sshll.u32 %s135_s9, 4  ;;  %s26_s12 = sshll.u32 %s136_s11, 4  ;;  %s17_s10 = int_to_ptr.vmem [resolvable:$true] %s16_s10  ;;  %s27_s12 = int_to_ptr.vmem [resolvable:$true] %s26_s12 }
   0x4   :  { %s63_s15 = scalar_lea.hbm %s189_s0, 64 }
   0x5   :  { %p64_p0 = scmp.ne.s32.totalorder %s189_s0, %s63_s15  ;;  %p67_p1 = scmp.lt.u32.totalorder %s63_s15, %s189_s0 }
   0x7   :  { %p69_p2 = pnand %p67_p1, %p64_p0 }
   0x9   :  { %72 = shalt.err (!%p69_p2)
}
   0xa   :  { %s73_s20 = scalar_lea.vmem %s17_s10, 64  ;;  %p78_p4 = scmp.lt.s32.totalorder %s17_s10, %s17_s10 }
   0xb   :  { %p74_p3 = scmp.ne.s32.totalorder %s17_s10, %s73_s20  ;;  %p79_p5 = scmp.lt.s32.totalorder %s73_s20, %s73_s20 }
   0xd   :  { %p80_p6 = por %p79_p5, %p78_p4 }
   0xf   :  { %p81_p7 = pnand %p80_p6, %p74_p3 }
  0x11   :  { %84 = shalt.err (!%p81_p7)
}
  0x12   :  { %19 = dma.hbm_to_vmem [thread:$0]  %s189_s0, 64, %s17_s10, [#allocation3]  }
  0x13   :  { %s85_s25 = scalar_lea.hbm %s190_s1, 64 }
  0x14   :  { %p86_p8 = scmp.ne.s32.totalorder %s190_s1, %s85_s25  ;;  %p89_p9 = scmp.lt.u32.totalorder %s85_s25, %s190_s1 }
  0x16   :  { %p91_p10 = pnand %p89_p9, %p86_p8 }
  0x18   :  { %94 = shalt.err (!%p91_p10)
}
  0x19   :  { %s95_s30 = scalar_lea.vmem %s27_s12, 64  ;;  %p100_p12 = scmp.lt.s32.totalorder %s27_s12, %s27_s12 }
  0x1a   :  { %p96_p11 = scmp.ne.s32.totalorder %s27_s12, %s95_s30  ;;  %p101_p13 = scmp.lt.s32.totalorder %s95_s30, %s95_s30 }
  0x1c   :  { %p102_p0 = por %p101_p13, %p100_p12 }
  0x1e   :  { %p103_p1 = pnand %p102_p0, %p96_p11 }
  0x20   :  { %106 = shalt.err (!%p103_p1)
}
  0x21   :  { %29 = dma.hbm_to_vmem [thread:$0]  %s190_s1, 64, %s27_s12, [#allocation6]  }
  0x22   :  { %129 = dma.done.wait [#allocation3], 64  }
  0x23   :  { %130 = vsyncadd [#allocation3], 4294967232 }
  0x24   :  { %131 = dma.done.wait [#allocation6], 64  }
  0x25   :  { %132 = vsyncadd [#allocation6], 4294967232  ;;  %v39_v0 = vlaneseq  ;;  %s137_s4 = smov [#allocation7]   ;;  %v36_v1 = vld [vmem:[#allocation2] sm:$0xf] }
  0x26   :  { %s50_s5 = sshll.u32 %s137_s4, 4  ;;  %v37_v2 = vld [vmem:[#allocation5] sm:$0xf]  ;;  %s51_s5 = int_to_ptr.vmem [resolvable:$true] %s50_s5 }
  0x27   :  { %vm41_vm0 = vcmp.lt.s32.totalorder %v39_v0, 512  ;;  %v38_v3 = vadd.f32 %v37_v2, %v36_v1  ;;  %s107_s6 = scalar_lea.vmem %s51_s5, 64  ;;  %p112_p3 = scmp.lt.s32.totalorder %s51_s5, %s51_s5 }
  0x28   :  { %p108_p2 = scmp.ne.s32.totalorder %s51_s5, %s107_s6  ;;  %p113_p4 = scmp.lt.s32.totalorder %s107_s6, %s107_s6 }
  0x29   :  { %43 = vst.msk [vmem:[#allocation7] sm:$0xf] %vm41_vm0, %v38_v3 }
  0x2a   :  { %p114_p5 = por %p113_p4, %p112_p3 }
  0x2c   :  { %p115_p6 = pnand %p114_p5, %p108_p2 }
  0x2e   :  { %118 = shalt.err (!%p115_p6)
}
  0x2f   :  { %s119_s8 = scalar_lea.hbm %s191_s2, 64 }
  0x30   :  { %p120_p7 = scmp.ne.s32.totalorder %s191_s2, %s119_s8  ;;  %p123_p8 = scmp.lt.u32.totalorder %s119_s8, %s191_s2 }
  0x32   :  { %p125_p9 = pnand %p123_p8, %p120_p7 }
  0x34   :  { %128 = shalt.err (!%p125_p9)
}
  0x35   :  { %53 = dma.vmem_to_hbm [thread:$0]  %s51_s5, 64, %s191_s2, [#allocation4]  }
  0x36   :  { %133 = dma.done.wait [#allocation4], 64  }
  0x37   :  { %134 = vsyncadd [#allocation4], 4294967232 }
  0x38   :  { %57 = vsyncpa [#allocation3], 1 }
  0x39   :  { %58 = vsyncpa [#allocation6], 1 }
  0x3a   :  { %59 = vsyncpa [#allocation4], 1 }

</bundles_post_ra>
